<compile_context>
chip_gen: v6e
topology: v6e:2x2x1
jax: 0.10.0
libtpu: 0.0.40
codegen_flags: <defaults>
</compile_context>

<pallas_src>
import numpy as np
import jax
import jax.numpy as jnp
from jax import lax
from jax.experimental import pallas as pl
from jax.experimental.pallas import tpu as pltpu


# ----------------------------- Pallas kernel -------------------------------

def fused_afdf_kernel(x_ref, mr_ref, mi_ref, mp_ref, mm_ref, o_ref):
    """x_ref: (tm, D) real input tile.
    mr/mi/mp/mm_ref: (L, D, D) composed per-layer complex matrices
    (real, imag, real+imag, imag-real).  o_ref: (tm, D) real output tile."""
    L = mr_ref.shape[0]
    xr = x_ref[...]

    if L == 1:
        # Real input, real output wanted -> only Re(M_0) matters.
        o_ref[...] = jnp.dot(xr, mr_ref[0], preferred_element_type=jnp.float32)
        return

    # Layer 0: the imaginary input plane is identically zero -> 2 matmuls.
    zr = jnp.dot(xr, mr_ref[0], preferred_element_type=jnp.float32)
    zi = jnp.dot(xr, mi_ref[0], preferred_element_type=jnp.float32)

    # Middle layers: Gauss 3-matmul complex product z <- z @ (Mr + i Mi).
    def layer_body(l, carry):
        zr, zi = carry
        k1 = jnp.dot(zr + zi, mr_ref[l], preferred_element_type=jnp.float32)
        k2 = jnp.dot(zr, mm_ref[l], preferred_element_type=jnp.float32)  # Mi-Mr
        k3 = jnp.dot(zi, mp_ref[l], preferred_element_type=jnp.float32)  # Mr+Mi
        return k1 - k3, k1 + k2

    if L > 2:
        zr, zi = lax.fori_loop(1, L - 1, layer_body, (zr, zi), unroll=True)

    # Last layer: only the real output plane is needed -> 2 matmuls, 1 store.
    o_ref[...] = (jnp.dot(zr, mr_ref[L - 1], preferred_element_type=jnp.float32)
                  - jnp.dot(zi, mi_ref[L - 1], preferred_element_type=jnp.float32))


def _pick_tm(n, cap=512):
    """Largest row tile (multiple of 8, divides n, <= cap), preferring >= 2
    grid blocks so v7x's two TensorCores both get work."""
    cands = [t for t in range(8, min(n, cap) + 1, 8) if n % t == 0]
    if not cands:
        return n
    two_block = [t for t in cands if n // t >= 2]
    return max(two_block) if two_block else max(cands)


def grouped_stacked_afdf(x, Mr, Mi, Mp, Mm, *, tm=None):
    """Forward pass: x (N, D) real -> (N, D) real (real part of final complex)."""
    N, D = x.shape
    L = Mr.shape[0]
    if tm is None:
        tm = _pick_tm(N)
    assert N % tm == 0

    row_spec = pl.BlockSpec((tm, D), lambda i: (i, 0))
    # Constant index_map -> stacked weights stay resident in VMEM across steps.
    w_spec = pl.BlockSpec((L, D, D), lambda i: (0, 0, 0))

    return pl.pallas_call(
        fused_afdf_kernel,
        out_shape=jax.ShapeDtypeStruct((N, D), jnp.float32),
        grid=(N // tm,),
        in_specs=[row_spec, w_spec, w_spec, w_spec, w_spec],
        out_specs=row_spec,
        compiler_params=pltpu.CompilerParams(dimension_semantics=("parallel",)),
    )(x, Mr, Mi, Mp, Mm)


# ------------------------------ glue / setup --------------------------------

def conv1x1_grouped_weight(key, d, g):
    """Deterministic init matching Conv1d(d, d, 1, groups=g, bias=False) weight
    shape (d, d//g, 1); returned squeezed to (d, d//g). PyTorch-style bound."""
    gs = d // g
    bound = 1.0 / np.sqrt(gs)
    return jax.random.uniform(key, (d, gs), jnp.float32, -bound, bound)


def block_diag_full(w, d, g):
    """Expand grouped conv weight (d, d//g) into dense block-diagonal (d, d)."""
    gs = d // g
    W = np.zeros((d, d), dtype=np.float64)
    w = np.asarray(w, dtype=np.float64)
    for gi in range(g):
        W[gi * gs:(gi + 1) * gs, gi * gs:(gi + 1) * gs] = w[gi * gs:(gi + 1) * gs, :]
    return W


def dft_matrices_f64(d):
    k = np.arange(d)
    ang = 2.0 * np.pi * np.outer(k, k) / d
    F = np.exp(-1j * ang)          # forward DFT (row-vector convention: z @ F)
    IF = np.exp(1j * ang) / d      # inverse DFT
    return F, IF


def build_params(key, d, g, n_layers):
    """Returns raw per-layer weights (for the reference) and the kernel's
    stacked composed matrices (Mr, Mi, Mr+Mi, Mi-Mr), each (L, d, d) f32."""
    F, IF = dft_matrices_f64(d)
    raw, Mr_l, Mi_l = [], [], []
    for li in range(n_layers):
        key, k1, k2, k3, k4 = jax.random.split(key, 5)
        A = block_diag_full(conv1x1_grouped_weight(k1, d, g), d, g)
        B = block_diag_full(conv1x1_grouped_weight(k2, d, g), d, g)
        DA = block_diag_full(conv1x1_grouped_weight(k3, d, g), d, g)
        DB = block_diag_full(conv1x1_grouped_weight(k4, d, g), d, g)
        # TODO(synk): the reference `Permute(channels)` class was not provided;
        # assume a fixed deterministic channel permutation per layer.
        perm = np.random.RandomState(1234 + li).permutation(d)
        raw.append((A, B, DA, DB, perm))

        # Compose the whole layer (A-linear -> DFT -> D-linear -> IDFT -> perm)
        # into one complex (d, d) matrix, in float64 host-side.
        M = (A + 1j * B).T @ F @ (DA + 1j * DB).T @ IF
        M = M[:, perm]
        Mr_l.append(M.real)
        Mi_l.append(M.imag)

    Mr = np.stack(Mr_l).astype(np.float32)
    Mi = np.stack(Mi_l).astype(np.float32)
    Mp = Mr + Mi   # Gauss precompute: Mr + Mi
    Mm = Mi - Mr   # Gauss precompute: Mi - Mr
    kern = tuple(jnp.asarray(m) for m in (Mr, Mi, Mp, Mm))
    return raw, kern


def reference(x, raw_params):
    """Pure-JAX complex reference (uses jnp.fft) mirroring the PyTorch module."""
    z = x.astype(jnp.complex64)
    for (A, B, DA, DB, perm) in raw_params:
        z = z @ jnp.asarray((A + 1j * B).T, jnp.complex64)
        z = jnp.fft.fft(z, axis=1)
        z = z @ jnp.asarray((DA + 1j * DB).T, jnp.complex64)
        z = jnp.fft.ifft(z, axis=1)
        z = z[:, perm]
    return jnp.real(z)


# --------------------------------- main --------------------------------------

if __name__ == "__main__":
    N, D, GROUPS, LAYERS = 16, 32, 4, 3

    key = jax.random.PRNGKey(0)
    key, kx, kw = jax.random.split(key, 3)
    x = jax.random.normal(kx, (N, D), jnp.float32)

    raw_params, (Mr, Mi, Mp, Mm) = build_params(kw, D, GROUPS, LAYERS)

    out = grouped_stacked_afdf(x, Mr, Mi, Mp, Mm)
    out = jax.block_until_ready(out)

    ref = reference(x, raw_params)
    np.testing.assert_allclose(np.asarray(out), np.asarray(ref),
                               rtol=1e-4, atol=1e-4)

    print("KERNEL_OK")
</pallas_src>

<mosaic_0001>
module attributes {stable_mosaic.version = 11 : i64} {
  func.func @fused_afdf_kernel(%arg0: i32, %arg1: memref<8x32xf32, #tpu.memory_space<vmem>>, %arg2: memref<3x32x32xf32, #tpu.memory_space<vmem>>, %arg3: memref<3x32x32xf32, #tpu.memory_space<vmem>>, %arg4: memref<3x32x32xf32, #tpu.memory_space<vmem>>, %arg5: memref<3x32x32xf32, #tpu.memory_space<vmem>>, %arg6: memref<8x32xf32, #tpu.memory_space<vmem>>) attributes {dimension_semantics = [#tpu.dimension_semantics<parallel>], iteration_bounds = array<i64: 2>, scalar_prefetch = 0 : i64, scratch_operands = 0 : i64, tpu.core_type = #tpu.core_type<tc>, window_params = [{transform_indices = @transform_0, window_bounds = array<i64: 8, 32>}, {pipeline_mode = #tpu.pipeline_mode<synchronous>, transform_indices = @transform_1, window_bounds = array<i64: 3, 32, 32>}, {pipeline_mode = #tpu.pipeline_mode<synchronous>, transform_indices = @transform_2, window_bounds = array<i64: 3, 32, 32>}, {pipeline_mode = #tpu.pipeline_mode<synchronous>, transform_indices = @transform_3, window_bounds = array<i64: 3, 32, 32>}, {pipeline_mode = #tpu.pipeline_mode<synchronous>, transform_indices = @transform_4, window_bounds = array<i64: 3, 32, 32>}, {transform_indices = @transform_5, window_bounds = array<i64: 8, 32>}]} {
    %c0 = arith.constant 0 : index
    %c0_0 = arith.constant 0 : index
    %0 = vector.load %arg1[%c0, %c0_0] : memref<8x32xf32, #tpu.memory_space<vmem>>, vector<8x32xf32>
    %c0_1 = arith.constant 0 : index
    %c0_2 = arith.constant 0 : index
    %c0_3 = arith.constant 0 : index
    %1 = vector.load %arg2[%c0_1, %c0_2, %c0_3] : memref<3x32x32xf32, #tpu.memory_space<vmem>>, vector<1x32x32xf32>
    %2 = vector.shape_cast %1 : vector<1x32x32xf32> to vector<32x32xf32>
    %cst = arith.constant dense<0.000000e+00> : vector<8x32xf32>
    %3 = tpu.matmul %0, %2, %cst {dimension_numbers = #tpu.dot_dimension_numbers<[1], [0], [0], [1], [0, 0, 1, 1], [], []>} : vector<8x32xf32>, vector<32x32xf32>, vector<8x32xf32> -> vector<8x32xf32>
    %c0_4 = arith.constant 0 : index
    %c0_5 = arith.constant 0 : index
    %c0_6 = arith.constant 0 : index
    %4 = vector.load %arg3[%c0_4, %c0_5, %c0_6] : memref<3x32x32xf32, #tpu.memory_space<vmem>>, vector<1x32x32xf32>
    %5 = vector.shape_cast %4 : vector<1x32x32xf32> to vector<32x32xf32>
    %cst_7 = arith.constant dense<0.000000e+00> : vector<8x32xf32>
    %6 = tpu.matmul %0, %5, %cst_7 {dimension_numbers = #tpu.dot_dimension_numbers<[1], [0], [0], [1], [0, 0, 1, 1], [], []>} : vector<8x32xf32>, vector<32x32xf32>, vector<8x32xf32> -> vector<8x32xf32>
    %c1_i32 = arith.constant 1 : i32
    %7 = arith.addf %3, %6 : vector<8x32xf32>
    %8 = arith.index_cast %c1_i32 : i32 to index
    %c0_8 = arith.constant 0 : index
    %c0_9 = arith.constant 0 : index
    %9 = vector.load %arg2[%8, %c0_8, %c0_9] : memref<3x32x32xf32, #tpu.memory_space<vmem>>, vector<1x32x32xf32>
    %10 = vector.shape_cast %9 : vector<1x32x32xf32> to vector<32x32xf32>
    %cst_10 = arith.constant dense<0.000000e+00> : vector<8x32xf32>
    %11 = tpu.matmul %7, %10, %cst_10 {dimension_numbers = #tpu.dot_dimension_numbers<[1], [0], [0], [1], [0, 0, 1, 1], [], []>} : vector<8x32xf32>, vector<32x32xf32>, vector<8x32xf32> -> vector<8x32xf32>
    %12 = arith.index_cast %c1_i32 : i32 to index
    %c0_11 = arith.constant 0 : index
    %c0_12 = arith.constant 0 : index
    %13 = vector.load %arg5[%12, %c0_11, %c0_12] : memref<3x32x32xf32, #tpu.memory_space<vmem>>, vector<1x32x32xf32>
    %14 = vector.shape_cast %13 : vector<1x32x32xf32> to vector<32x32xf32>
    %cst_13 = arith.constant dense<0.000000e+00> : vector<8x32xf32>
    %15 = tpu.matmul %3, %14, %cst_13 {dimension_numbers = #tpu.dot_dimension_numbers<[1], [0], [0], [1], [0, 0, 1, 1], [], []>} : vector<8x32xf32>, vector<32x32xf32>, vector<8x32xf32> -> vector<8x32xf32>
    %16 = arith.index_cast %c1_i32 : i32 to index
    %c0_14 = arith.constant 0 : index
    %c0_15 = arith.constant 0 : index
    %17 = vector.load %arg4[%16, %c0_14, %c0_15] : memref<3x32x32xf32, #tpu.memory_space<vmem>>, vector<1x32x32xf32>
    %18 = vector.shape_cast %17 : vector<1x32x32xf32> to vector<32x32xf32>
    %cst_16 = arith.constant dense<0.000000e+00> : vector<8x32xf32>
    %19 = tpu.matmul %6, %18, %cst_16 {dimension_numbers = #tpu.dot_dimension_numbers<[1], [0], [0], [1], [0, 0, 1, 1], [], []>} : vector<8x32xf32>, vector<32x32xf32>, vector<8x32xf32> -> vector<8x32xf32>
    %20 = arith.subf %11, %19 : vector<8x32xf32>
    %21 = arith.addf %11, %15 : vector<8x32xf32>
    %c1_i32_17 = arith.constant 1 : i32
    %c2 = arith.constant 2 : index
    %c0_18 = arith.constant 0 : index
    %c0_19 = arith.constant 0 : index
    %22 = vector.load %arg2[%c2, %c0_18, %c0_19] : memref<3x32x32xf32, #tpu.memory_space<vmem>>, vector<1x32x32xf32>
    %23 = vector.shape_cast %22 : vector<1x32x32xf32> to vector<32x32xf32>
    %cst_20 = arith.constant dense<0.000000e+00> : vector<8x32xf32>
    %24 = tpu.matmul %20, %23, %cst_20 {dimension_numbers = #tpu.dot_dimension_numbers<[1], [0], [0], [1], [0, 0, 1, 1], [], []>} : vector<8x32xf32>, vector<32x32xf32>, vector<8x32xf32> -> vector<8x32xf32>
    %c2_21 = arith.constant 2 : index
    %c0_22 = arith.constant 0 : index
    %c0_23 = arith.constant 0 : index
    %25 = vector.load %arg3[%c2_21, %c0_22, %c0_23] : memref<3x32x32xf32, #tpu.memory_space<vmem>>, vector<1x32x32xf32>
    %26 = vector.shape_cast %25 : vector<1x32x32xf32> to vector<32x32xf32>
    %cst_24 = arith.constant dense<0.000000e+00> : vector<8x32xf32>
    %27 = tpu.matmul %21, %26, %cst_24 {dimension_numbers = #tpu.dot_dimension_numbers<[1], [0], [0], [1], [0, 0, 1, 1], [], []>} : vector<8x32xf32>, vector<32x32xf32>, vector<8x32xf32> -> vector<8x32xf32>
    %28 = arith.subf %24, %27 : vector<8x32xf32>
    %c0_25 = arith.constant 0 : index
    %c0_26 = arith.constant 0 : index
    %29 = vector.load %arg6[%c0_25, %c0_26] : memref<8x32xf32, #tpu.memory_space<vmem>>, vector<8x32xf32>
    tpu.vector_store %arg6[%c0_25, %c0_26], %28 {strides = array<i32>} : memref<8x32xf32, #tpu.memory_space<vmem>>, vector<8x32xf32>,
    return
  }
  func.func @transform_0(%arg0: i32) -> (i32, i32) {
    %c0_i32 = arith.constant 0 : i32
    %c0_i32_0 = arith.constant 0 : i32
    return %arg0, %c0_i32 : i32, i32
  }
  func.func @transform_1(%arg0: i32) -> (i32, i32, i32) {
    %c0_i32 = arith.constant 0 : i32
    %c0_i32_0 = arith.constant 0 : i32
    %c0_i32_1 = arith.constant 0 : i32
    %c0_i32_2 = arith.constant 0 : i32
    return %c0_i32, %c0_i32_0, %c0_i32_1 : i32, i32, i32
  }
  func.func @transform_2(%arg0: i32) -> (i32, i32, i32) {
    %c0_i32 = arith.constant 0 : i32
    %c0_i32_0 = arith.constant 0 : i32
    %c0_i32_1 = arith.constant 0 : i32
    %c0_i32_2 = arith.constant 0 : i32
    return %c0_i32, %c0_i32_0, %c0_i32_1 : i32, i32, i32
  }
  func.func @transform_3(%arg0: i32) -> (i32, i32, i32) {
    %c0_i32 = arith.constant 0 : i32
    %c0_i32_0 = arith.constant 0 : i32
    %c0_i32_1 = arith.constant 0 : i32
    %c0_i32_2 = arith.constant 0 : i32
    return %c0_i32, %c0_i32_0, %c0_i32_1 : i32, i32, i32
  }
  func.func @transform_4(%arg0: i32) -> (i32, i32, i32) {
    %c0_i32 = arith.constant 0 : i32
    %c0_i32_0 = arith.constant 0 : i32
    %c0_i32_1 = arith.constant 0 : i32
    %c0_i32_2 = arith.constant 0 : i32
    return %c0_i32, %c0_i32_0, %c0_i32_1 : i32, i32, i32
  }
  func.func @transform_5(%arg0: i32) -> (i32, i32) {
    %c0_i32 = arith.constant 0 : i32
    %c0_i32_0 = arith.constant 0 : i32
    return %arg0, %c0_i32 : i32, i32
  }
}

</mosaic_0001>

<bundles_post_ra>
// kernel: tpu_custom_call.1
= control target key start
LH: loop header
LB: loop body
LE: loop exit
PB: predicated region body
PF: predicated region fallthrough
CT: control target
= control target key end

     0   :  { %10 = vsyncpa [#allocation3], 0  ;;  %s1722_s0 = inlined_call_operand.hbm [shape: f32[16,32], index: 0, kind: input, shape index: {}]   ;;  %s1723_s1 = inlined_call_operand.hbm [shape: f32[3,32,32], index: 1, kind: input, shape index: {}]   ;;  %s1724_s2 = inlined_call_operand.hbm [shape: f32[3,32,32], index: 2, kind: input, shape index: {}]   ;;  %s1725_s3 = inlined_call_operand.hbm [shape: f32[3,32,32], index: 3, kind: input, shape index: {}]   ;;  %s1726_s4 = inlined_call_operand.hbm [shape: f32[3,32,32], index: 4, kind: input, shape index: {}]   ;;  %s1727_s5 = inlined_call_operand.hbm [shape: f32[16,32], index: 5, kind: output, shape index: {}]  }
   0x1   :  { %12 = vsyncpa [#allocation3 + $0x1], 0 }
   0x2   :  { %13 = vsyncpa [#allocation6], 0 }
   0x3   :  { %14 = vsyncpa [#allocation9], 0 }
   0x4   :  { %15 = vsyncpa [#allocation4], 0 }
   0x5   :  { %17 = vsyncpa [#allocation4 + $0x1], 0  ;;  %s1444_s18 = smov 0   ;;  %s1446_s19 = smov 0  }
   0x6   :  { %s1448_s20 = smov 0   ;;  %s1450_s21 = smov 0  }
   0x7 LB: > { %s1404_s22 = smov [#allocation5]   ;;  %s1465_s24 = sadd.s32 4294967295, %s1402_s21   ;;  %s1402_s21 = sphi %s1450_s21, %s1751_s21   ;;  %s1398_s20 = sphi %s1448_s20, %s1750_s20   ;;  %s1394_s19 = sphi %s1446_s19, %s1749_s19   ;;  %s1390_s18 = sphi %s1444_s18, %s1748_s18  }
   0x8   : > { %s176_s23 = sshll.u32 %s1404_s22, 4  ;;  %p969_p0 = scmp.ge.s32.totalorder %s1402_s21, 1  ;;  %s177_s23 = int_to_ptr.vmem [resolvable:$true] %s176_s23 }
   0x9   : > { %p1728_p1 = scmp.eq.s32.totalorder %s1465_s24, 0  ;;  %p164_p2 = scmp.lt.s32.totalorder %s1402_s21, 3 }
   0xa   : > { %s1405_s26 = smov [#allocation8]   ;;  %s1406_s29 = smov [#allocation7]  }
   0xb   : > { %p1470_p3 = pnand %p969_p0, %p164_p2  ;;  %s202_s27 = sshll.u32 %s1405_s26, 4  ;;  %s1483_s27 = int_to_ptr.vmem [resolvable:$true] %s202_s27 }
   0xc   : > { %s189_s30 = sshll.u32 %s1406_s29, 4  ;;  %s1209_s6 = scalar_lea.vmem %s177_s23, 1536  ;;  %s1485_s30 = int_to_ptr.vmem [resolvable:$true] %s189_s30 }
   0xd   : > { %s1732_s25 = scalar_select %p1470_p3, 1, 0 }
   0xe   : > { %p1127_p5 = pneg %p1470_p3  ;;  %p1210_p8 = scmp.ne.s32.totalorder %s177_s23, %s1209_s6 }
   0xf   : > { %p1217_p11 = scmp.lt.s32.totalorder %s177_s23, %s177_s23  ;;  %p1218_p12 = scmp.lt.s32.totalorder %s1209_s6, %s1209_s6 }
  0x10   : > { %p1479_p6 = pnand %p1127_p5, %p1728_p1 }
  0x11   : > { %p1219_p13 = por %p1218_p12, %p1217_p11 }
  0x12   : > { %p1200_p7 = pneg %p1479_p6 }
  0x14   : > { %p1212_p9 = pnand %p1210_p8, %p1200_p7 }
  0x16   : > { %p1213_p10 = pneg %p1212_p9 }
  0x18   : > { %p1220_p0 = pnand %p1219_p13, %p1213_p10 }
  0x1a   : > { %1223 = shalt.err (!%p1220_p0)
}
  0x1b   : > { %s1407_s7 = smov 128   ;;  %s1408_s8 = smov 8  }
  0x1c   : > { %1130 = dma.hbm_to_vmem [thread:$0]  (!%p1479_p6), %s1723_s1, 1536, %s177_s23, [#allocation6], %s1407_s7, %s1407_s7, %s1408_s8  }
  0x1d   : > { %s1235_s11 = scalar_lea.vmem %s1483_s27, 1536  ;;  %p1243_p9 = scmp.lt.s32.totalorder %s1483_s27, %s1483_s27 }
  0x1e   : > { %p1236_p2 = scmp.ne.s32.totalorder %s1483_s27, %s1235_s11  ;;  %p1244_p10 = scmp.lt.s32.totalorder %s1235_s11, %s1235_s11 }
  0x20   : > { %p1238_p5 = pnand %p1236_p2, %p1200_p7  ;;  %p1245_p11 = por %p1244_p10, %p1243_p9 }
  0x22   : > { %p1239_p8 = pneg %p1238_p5 }
  0x24   : > { %p1246_p12 = pnand %p1245_p11, %p1239_p8 }
  0x26   : > { %1249 = shalt.err (!%p1246_p12)
}
  0x27   : > { %1136 = dma.hbm_to_vmem [thread:$0]  (!%p1479_p6), %s1725_s3, 1536, %s1483_s27, [#allocation9], %s1407_s7, %s1407_s7, %s1408_s8  }
  0x28   : > { %s1261_s14 = scalar_lea.vmem %s1485_s30, 1536  ;;  %p1269_p5 = scmp.lt.s32.totalorder %s1485_s30, %s1485_s30 }
  0x29   : > { %p1262_p13 = scmp.ne.s32.totalorder %s1485_s30, %s1261_s14  ;;  %p1270_p8 = scmp.lt.s32.totalorder %s1261_s14, %s1261_s14 }
  0x2b   : > { %p1264_p0 = pnand %p1262_p13, %p1200_p7  ;;  %p1271_p9 = por %p1270_p8, %p1269_p5 }
  0x2d   : > { %p1265_p2 = pneg %p1264_p0 }
  0x2f   : > { %p1272_p10 = pnand %p1271_p9, %p1265_p2 }
  0x31   : > { %1275 = shalt.err (!%p1272_p10)
}
  0x32   : > { %1133 = dma.hbm_to_vmem [thread:$0]  (!%p1479_p6), %s1724_s2, 1536, %s1485_s30, [#allocation6], %s1407_s7, %s1407_s7, %s1408_s8  }
  0x33   : > { %s1409_s17 = smov [#allocation10]  }
  0x34   : > { %s215_s22 = sshll.u32 %s1409_s17, 4  ;;  %s216_s22 = int_to_ptr.vmem [resolvable:$true] %s215_s22 }
  0x35   : > { %s1287_s23 = scalar_lea.vmem %s216_s22, 1536  ;;  %p1295_p0 = scmp.lt.s32.totalorder %s216_s22, %s216_s22 }
  0x36   : > { %p1288_p11 = scmp.ne.s32.totalorder %s216_s22, %s1287_s23  ;;  %p1296_p2 = scmp.lt.s32.totalorder %s1287_s23, %s1287_s23 }
  0x38   : > { %p1290_p12 = pnand %p1288_p11, %p1200_p7  ;;  %p1297_p5 = por %p1296_p2, %p1295_p0 }
  0x3a   : > { %p1291_p13 = pneg %p1290_p12 }
  0x3c   : > { %p1298_p8 = pnand %p1297_p5, %p1291_p13 }
  0x3e   : > { %1301 = shalt.err (!%p1298_p8)
}
  0x3f   : > { %1139 = dma.hbm_to_vmem [thread:$0]  (!%p1479_p6), %s1726_s4, 1536, %s216_s22, [#allocation9], %s1407_s7, %s1407_s7, %s1408_s8  }
  0x40   : > { %s968_s28 = sadd.s32 4294967294, %s1402_s21   ;;  %s1545_s29 = sadd.s32 1, %s1402_s21  }
  0x41   : > { %s27_s30 = ssub.s32 %s1402_s21, %s1545_s29  ;;  %s30_s6 = sadd.s32 1, %s1398_s20 }
  0x42   : > { %p28_p7 = scmp.eq.s32.totalorder %s27_s30, 0  ;;  %p37_p9 = scmp.ne.s32.totalorder %s1398_s20, %s1394_s19 }
  0x43   : > { %p38_p10 = scmp.eq.s32.totalorder %s1402_s21, 0  ;;  %p43_p11 = scmp.ne.s32.totalorder %s1394_s19, %s1390_s18 }
  0x44   : > { %s1556_s9 = scalar_select %p28_p7, %s1398_s20, %s30_s6  }
  0x45   : > { %p1558_p12 = por %p38_p10, %p37_p9  ;;  %p1564_p6 = por %p1728_p1, %p43_p11 }
  0x46   : > { %p151_p13 = scmp.eq.s32.totalorder %s1465_s24, 1  ;;  %p157_p0 = scmp.eq.s32.totalorder %s968_s28, 1 }
  0x47   : > { %s1735_s7 = scalar_select %p1564_p6, 1, 0 }
  0x48   : > { %p1152_p2 = scmp.lt.s32.totalorder %s1402_s21, 2  ;;  %s229_s8 = sand.u32 1, %s1398_s20  }
  0x49   : > { %p1571_p5 = por %p151_p13, %p37_p9  ;;  %p1575_p8 = por %p157_p0, %p43_p11 }
  0x4a   : > { %s975_s13 = sshll.u32 %s229_s8, 3  ;;  %s976_s14 = sshll.u32 %s1402_s21, 7 }
  0x4b   : > { %s1736_s11 = scalar_select %p1571_p5, 1, 0 }
  0x4c   : > { %s1737_s12 = scalar_select %p1575_p8, 1, 0 }
  0x4d   : > { %s1583_s17 = scalar_lea.hbm %s1722_s0, %s976_s14  ;;  %s233_s22 = scalar_lea.vmem [#allocation2], %s975_s13 }
  0x4e   : > { %s240_s23 = sshll.u32 %s233_s22, 4  ;;  %p1587_p7 = pnand %p1152_p2, %p1558_p12  ;;  %s241_s23 = int_to_ptr.vmem [resolvable:$true] %s240_s23 }
  0x4f   : > { %s230_s27 = scalar_lea.sflag [#allocation3], %s229_s8  ;;  %s1302_s28 = scalar_lea.hbm %s1583_s17, 128 }
  0x50   : > { %p1303_p9 = scmp.ne.s32.totalorder %s1583_s17, %s1302_s28  ;;  %p1304_p10 = pneg %p1587_p7 }
  0x51   : > { %s1307_s14 = scalar_lea.hbm %s1722_s0, 256  ;;  %p1308_p0 = scmp.lt.s32.totalorder %s1583_s17, %s1722_s0 }
  0x52   : > { %p1305_p11 = pnand %p1304_p10, %p1303_p9  ;;  %p1309_p12 = scmp.lt.s32.totalorder %s1307_s14, %s1302_s28 }
  0x54   : > { %p1306_p13 = pneg %p1305_p11  ;;  %p1310_p2 = por %p1309_p12, %p1308_p0 }
  0x56   : > { %p1311_p4 = pnand %p1310_p2, %p1306_p13 }
  0x58   : > { %1314 = shalt.err (!%p1311_p4)
}
  0x59   : > { %s1315_s10 = scalar_lea.vmem %s241_s23, 128  ;;  %s1410_s8 = smov [#allocation2]  }
  0x5a   : > { %p1316_p1 = scmp.ne.s32.totalorder %s241_s23, %s1315_s10  ;;  %s1320_s16 = sshll.u32 %s1410_s8, 4  ;;  %s1321_s16 = int_to_ptr.vmem [resolvable:$false] %s1320_s16 }
  0x5b   : > { %s1322_s22 = scalar_lea.vmem %s1321_s16, 256  ;;  %p1323_p9 = scmp.lt.s32.totalorder %s241_s23, %s1321_s16 }
  0x5c   : > { %p1318_p8 = pnand %p1316_p1, %p1304_p10  ;;  %p1324_p11 = scmp.lt.s32.totalorder %s1322_s22, %s1315_s10 }
  0x5e   : > { %p1319_p5 = pneg %p1318_p8  ;;  %p1325_p6 = por %p1324_p11, %p1323_p9 }
  0x60   : > { %p1326_p3 = pnand %p1325_p6, %p1319_p5 }
  0x62   : > { %1329 = shalt.err (!%p1326_p3)
}
  0x63   : > { %1143 = dma.hbm_to_vmem [thread:$0]  (!%p1587_p7), %s1583_s17, 128, %s241_s23, %s230_s27  }
  0x64   : > { %p1739_p13 = scmp.ne.s32.totalorder %s1732_s25, 0 }
  0x65   : > { %s1608_s28 = sand.u32 (!%p1739_p13), 1, %s1394_s19   ;;  %p1740_p1 = scmp.ne.s32.totalorder (!%p1739_p13), %s1735_s7, 0 }
  0x66   : > { %249 = sbr.rel (%p1739_p13) target bundleno = 730 (0x2da), region = 40  ;;  %s978_s30 = sshll.u32 (!%p1739_p13), %s1608_s28, 3 }
  0x67   : > { %s252_s6 = scalar_lea.sflag (!%p1739_p13), [#allocation3], %s1608_s28  ;;  %s1614_s14 = scalar_lea.vmem (!%p1739_p13), [#allocation2], %s978_s30 }
  0x6b   : > { %1373 = dma.done.wait (%p1740_p1), %s252_s6, 128  }
  0x6c   : > { %1375 = vsyncadd (%p1740_p1), %s252_s6, 4294967168  ;;  %p1741_p3 = scmp.eq.s32.totalorder %s1465_s24, 0 }
  0x6e   : > { %1377 = dma.done.wait (%p1741_p3), [#allocation6], 3072   ;;  %p1742_p4 = pmov %p1741_p3 }
  0x6f   : > { %p1743_p6 = pmov %p1741_p3 }
  0x70   : > { %1379 = vsyncadd (%p1742_p4), [#allocation6], 4294964224 }
  0x71   : > { %1381 = dma.done.wait (%p1743_p6), [#allocation9], 3072   ;;  %p1744_p5 = pmov %p1741_p3 }
  0x72   : > { %v1411_v0 = vmov 0.0   ;;  %vm1412_vm0 = vmmov 0   ;;  %v302_v1 = vld [vmem:[#allocation5 + $0x18] sm:$0xff]  ;;  %v301_v3 = vld [vmem:[#allocation5 + $0x10] sm:$0xff]  ;;  %v300_v5 = vld [vmem:[#allocation5 + $0x8] sm:$0xff]  ;;  %vm303_vm1 = vcmask 261120  }
  0x73   : > { %1383 = vsyncadd (%p1744_p5), [#allocation9], 4294964224  ;;  %1030 = vmatprep.subr.mxu0 %v1411_v0  ;;  %1041 = vmatprep.subr.mxu1 %v1411_v0  ;;  %v380_v2 = vld [vmem:[#allocation7 + $0x18] sm:$0xff]  ;;  %v379_v4 = vld [vmem:[#allocation7 + $0x10] sm:$0xff]  ;;  %s992_s25 = sshll.u32 %s1465_s24, 7  ;;  %s297_s7 = scalar_lea.vmem [#allocation11], %s978_s30 }
  0x74   : > { %1038 = vmatprep.mubr.msk.f32.mxu0 %vm1412_vm0, %v1411_v0  ;;  %1049 = vmatprep.mubr.msk.f32.mxu1 %vm1412_vm0, %v1411_v0  ;;  %v378_v6 = vld [vmem:[#allocation7 + $0x8] sm:$0xff]  ;;  %v299_v7 = vld [vmem:[#allocation5] sm:$0xff]  ;;  %v298_v9 = vld [vmem:[%s1614_s14] sm:$0xff]  ;;  %s860_s17 = sshll.u32 %s297_s7, 4  ;;  %s1684_s27 = scalar_lea.hbm %s1727_s5, %s992_s25  ;;  %s861_s17 = int_to_ptr.vmem [resolvable:$true] %s860_s17 }
  0x75   : > { %1031 = vmatpush3.msra.mxu0 %v302_v1  ;;  %1042 = vmatpush3.msra.mxu1 %v380_v2  ;;  %v377_v8 = vld [vmem:[#allocation7] sm:$0xff]  ;;  %v534_v10 = vld [vmem:[#allocation10 + $0x38] sm:$0xff]  ;;  %v533_v12 = vld [vmem:[#allocation10 + $0x30] sm:$0xff]  ;;  %s847_s13 = scalar_lea.sflag [#allocation4], %s1608_s28  ;;  %s1330_s15 = scalar_lea.vmem %s861_s17, 128 }
  0x76   : > { %1032 = vmatprep.subr.mxu0 %v1411_v0  ;;  %1043 = vmatprep.subr.mxu1 %v1411_v0  ;;  %v456_v11 = vld [vmem:[#allocation5 + $0x38] sm:$0xff]  ;;  %v455_v13 = vld [vmem:[#allocation5 + $0x30] sm:$0xff]  ;;  %v532_v14 = vld [vmem:[#allocation10 + $0x28] sm:$0xff]  ;;  %p1331_p8 = scmp.ne.s32.totalorder %s861_s17, %s1330_s15  ;;  %p1745_p7 = scmp.ne.s32.totalorder %s1736_s11, 0 }
  0x77   : > { %1033 = vmatpush3.msra.mxu0 %v301_v3  ;;  %1044 = vmatpush3.msra.mxu1 %v379_v4  ;;  %v454_v15 = vld [vmem:[#allocation5 + $0x28] sm:$0xff]  ;;  %v531_v16 = vld [vmem:[#allocation10 + $0x20] sm:$0xff]  ;;  %v612_v21 = vld [vmem:[#allocation8 + $0x38] sm:$0xff]  ;;  %s1413_s24 = smov [#allocation11]  }
  0x78   : > { %1034 = vmatprep.subr.mxu0 %v1411_v0  ;;  %1045 = vmatprep.subr.mxu1 %v1411_v0  ;;  %v453_v17 = vld [vmem:[#allocation5 + $0x20] sm:$0xff]  ;;  %v611_v24 = vld [vmem:[#allocation8 + $0x30] sm:$0xff]  ;;  %v610_v25 = vld [vmem:[#allocation8 + $0x28] sm:$0xff]  ;;  %p1332_p10 = pnand %p1331_p8, %p1745_p7  ;;  %s1334_s10 = sshll.u32 %s1413_s24, 4  ;;  %s1335_s10 = int_to_ptr.vmem [resolvable:$false] %s1334_s10 }
  0x79   : > { %1035 = vmatpush3.msra.mxu0 %v300_v5  ;;  %1046 = vmatpush3.msra.mxu1 %v378_v6  ;;  %v609_v26 = vld [vmem:[#allocation8 + $0x20] sm:$0xff]  ;;  %v770_v27 = vld [vmem:[#allocation7 + $0x58] sm:$0xff]  ;;  %v769_v28 = vld [vmem:[#allocation7 + $0x50] sm:$0xff]  ;;  %s1336_s8 = scalar_lea.vmem %s1335_s10, 256  ;;  %p1337_p12 = scmp.lt.s32.totalorder %s861_s17, %s1335_s10 }
  0x7a   : > { %1036 = vmatprep.subr.mxu0 %v1411_v0  ;;  %1047 = vmatprep.subr.mxu1 %v1411_v0  ;;  %v768_v29 = vld [vmem:[#allocation7 + $0x48] sm:$0xff]  ;;  %v767_v30 = vld [vmem:[#allocation7 + $0x40] sm:$0xff]  ;;  %v692_v31 = vld [vmem:[#allocation5 + $0x58] sm:$0xff]  ;;  %p1333_p0 = pneg %p1332_p10  ;;  %p1338_p2 = scmp.lt.s32.totalorder %s1336_s8, %s1330_s15 }
  0x7b   : > { %1037 = vmatpush3.msra.mxu0 %v299_v7  ;;  %1048 = vmatpush3.msra.mxu1 %v377_v8  ;;  %v691_v32 = vld [vmem:[#allocation5 + $0x50] sm:$0xff]  ;;  %v690_v33 = vld [vmem:[#allocation5 + $0x48] sm:$0xff]  ;;  %v689_v34 = vld [vmem:[#allocation5 + $0x40] sm:$0xff] }
  0x7c   : > { %1039 = vmatmul.mubr.msk.f32.vlgmr.msra.gmra.mxu0 %vm303_vm1, %v298_v9  ;;  %1050 = vmatmul.mubr.msk.f32.vlgmr.msra.gmra.mxu1 %vm303_vm1, %v298_v9  ;;  %p1339_p9 = por %p1338_p2, %p1337_p12 }
  0x7d   : > { %1063 = vmatprep.subr.mxu1 %v1411_v0  ;;  %1052 = vmatprep.subr.mxu0 %v1411_v0 }
  0x7e   : > { %1064 = vmatpush3.msra.mxu1 %v534_v10  ;;  %1053 = vmatpush3.msra.mxu0 %v456_v11  ;;  %p1340_p11 = pnand %p1339_p9, %p1333_p0 }
  0x7f   : > { %1065 = vmatprep.subr.mxu1 %v1411_v0  ;;  %1054 = vmatprep.subr.mxu0 %v1411_v0 }
  0x80   : > { %1066 = vmatpush3.msra.mxu1 %v533_v12  ;;  %1055 = vmatpush3.msra.mxu0 %v455_v13 }
  0x81   : > { %1067 = vmatprep.subr.mxu1 %v1411_v0  ;;  %1056 = vmatprep.subr.mxu0 %v1411_v0 }
  0x82   : > { %1068 = vmatpush3.msra.mxu1 %v532_v14  ;;  %1057 = vmatpush3.msra.mxu0 %v454_v15 }
  0x83   : > { %1069 = vmatprep.subr.mxu1 %v1411_v0  ;;  %1058 = vmatprep.subr.mxu0 %v1411_v0 }
  0x84   : > { %1071 = vmatprep.mubr.msk.f32.mxu1 %vm1412_vm0, %v1411_v0  ;;  %1060 = vmatprep.mubr.msk.f32.mxu0 %vm1412_vm0, %v1411_v0 }
  0x85   : > { %1070 = vmatpush3.msra.mxu1 %v531_v16  ;;  %1059 = vmatpush3.msra.mxu0 %v453_v17 }
  0x86   : > { %1085 = vmatprep.subr.mxu1 %v1411_v0  ;;  %1074 = vmatprep.subr.mxu0 %v1411_v0 }
 0x13c   : > { %v373_v18 = vpop.f32.mrf.mxu0  ;;  %v447_v19 = vpop.f32.mrf.mxu1 }
 0x13d   : > { %v451_v20 = vadd.f32 %v447_v19, %v373_v18  ;;  %1072 = vmatmul.mubr.msk.f32.vlgmr.msra.gmra.mxu1 %vm303_vm1, %v373_v18 }
 0x13e   : > { %v1040_v22 = vpop.f32.mrf.mxu0  ;;  %v1051_v23 = vpop.f32.mrf.mxu1  ;;  %1093 = vmatprep.mubr.msk.f32.mxu1 %vm1412_vm0, %v1411_v0  ;;  %1086 = vmatpush3.msra.mxu1 %v692_v31 }
 0x13f   : > { %1061 = vmatmul.mubr.msk.f32.vlgmr.msra.gmra.mxu0 %vm303_vm1, %v451_v20  ;;  %1087 = vmatprep.subr.mxu1 %v1411_v0 }
 0x140   : > { %1075 = vmatpush3.msra.mxu0 %v612_v21  ;;  %1082 = vmatprep.mubr.msk.f32.mxu0 %vm1412_vm0, %v1411_v0 }
 0x141   : > { %1076 = vmatprep.subr.mxu0 %v1411_v0  ;;  %1088 = vmatpush3.msra.mxu1 %v691_v32 }
 0x142   : > { %1077 = vmatpush3.msra.mxu0 %v611_v24  ;;  %1089 = vmatprep.subr.mxu1 %v1411_v0 }
 0x143   : > { %1078 = vmatprep.subr.mxu0 %v1411_v0  ;;  %1090 = vmatpush3.msra.mxu1 %v690_v33 }
 0x144   : > { %1079 = vmatpush3.msra.mxu0 %v610_v25  ;;  %1091 = vmatprep.subr.mxu1 %v1411_v0 }
 0x145   : > { %1080 = vmatprep.subr.mxu0 %v1411_v0  ;;  %1092 = vmatpush3.msra.mxu1 %v689_v34 }
 0x146   : > { %1081 = vmatpush3.msra.mxu0 %v609_v26 }
 0x147   : > { %1083 = vmatmul.mubr.msk.f32.vlgmr.msra.gmra.mxu0 %vm303_vm1, %v447_v19  ;;  %1096 = vmatprep.subr.mxu0 %v1411_v0 }
 0x148   : > { %1097 = vmatpush3.msra.mxu0 %v770_v27  ;;  %1104 = vmatprep.mubr.msk.f32.mxu0 %vm1412_vm0, %v1411_v0 }
 0x149   : > { %1098 = vmatprep.subr.mxu0 %v1411_v0 }
 0x14a   : > { %1099 = vmatpush3.msra.mxu0 %v769_v28 }
 0x14b   : > { %1100 = vmatprep.subr.mxu0 %v1411_v0 }
 0x14c   : > { %1101 = vmatpush3.msra.mxu0 %v768_v29 }
 0x14d   : > { %1102 = vmatprep.subr.mxu0 %v1411_v0 }
 0x14e   : > { %1103 = vmatpush3.msra.mxu0 %v767_v30 }
 0x1fd   : > { %v604_v35 = vpop.f32.mrf.mxu1 }
 0x1ff   : > { %v526_v36 = vpop.f32.mrf.mxu0  ;;  %v1073_v37 = vpop.f32.mrf.mxu1 }
 0x200   : > { %v687_v38 = vadd.f32 %v604_v35, %v526_v36 }
 0x201   : > { %v1062_v39 = vpop.f32.mrf.mxu0 }
 0x202   : > { %1105 = vmatmul.mubr.msk.f32.vlgmr.msra.gmra.mxu0 %vm303_vm1, %v687_v38 }
 0x207   : > { %v682_v40 = vpop.f32.mrf.mxu0 }
 0x208   : > { %v686_v41 = vsub.f32 %v526_v36, %v682_v40 }
 0x209   : > { %v1084_v42 = vpop.f32.mrf.mxu0 }
 0x20a   : > { %1094 = vmatmul.mubr.msk.f32.vlgmr.msra.gmra.mxu1 %vm303_vm1, %v686_v41 }
 0x2c2   : > { %v840_v43 = vpop.f32.mrf.mxu0 }
 0x2c4   : > { %v1106_v44 = vpop.f32.mrf.mxu0 }
 0x2ca   : > { %v762_v45 = vpop.f32.mrf.mxu1 }
 0x2cb   : > { %v844_v46 = vsub.f32 %v762_v45, %v840_v43 }
 0x2cc   : > { %v1095_v47 = vpop.f32.mrf.mxu1 }
 0x2cd   : > { %845 = vst.msk [vmem:[%s297_s7] sm:$0xff] %vm303_vm1, %v844_v46 }
 0x2ce   : > { %1343 = shalt.err (!%p1340_p11)
}
 0x2cf   : > { %s1344_s16 = scalar_lea.hbm %s1684_s27, 128  ;;  %s1348_s30 = scalar_lea.hbm %s1727_s5, 256 }
 0x2d0   : > { %p1345_p13 = scmp.ne.s32.totalorder %s1684_s27, %s1344_s16  ;;  %p1349_p4 = scmp.lt.s32.totalorder %s1684_s27, %s1727_s5 }
 0x2d1   : > { %p1350_p6 = scmp.lt.s32.totalorder %s1348_s30, %s1344_s16 }
 0x2d2   : > { %p1346_p1 = pnand %p1345_p13, %p1745_p7 }
 0x2d3   : > { %p1351_p5 = por %p1350_p6, %p1349_p4 }
 0x2d4   : > { %p1347_p3 = pneg %p1346_p1 }
 0x2d6   : > { %p1352_p8 = pnand %p1351_p5, %p1347_p3 }
 0x2d8   : > { %1355 = shalt.err (!%p1352_p8)
}
 0x2d9   : > { %1125 = dma.vmem_to_hbm [thread:$0]  (%p1745_p7), %s861_s17, 128, %s1684_s27, %s847_s13  }
 0x2da PF: > { %s872_s25 = sand.u32 1, %s1390_s18   ;;  %p1746_p10 = scmp.ne.s32.totalorder %s1737_s12, 0 }
 0x2db   : > { %p1747_p0 = scmp.ge.s32.totalorder %s1402_s21, 2  ;;  %s873_s7 = scalar_lea.sflag [#allocation4], %s872_s25 }
 0x2dd   : > { %p1145_p12 = pnand %p1747_p0, %p1746_p10 }
 0x2df   : > { %p1146_p2 = pneg %p1145_p12 }
 0x2e1   : > { %1385 = dma.done.wait (%p1146_p2), %s873_s7, 128  }
 0x2e2   : > { %1387 = vsyncadd (%p1146_p2), %s873_s7, 4294967168  ;;  %p20_p9 = scmp.ge.s32.totalorder %s1545_s29, 4   ;;  %s1748_s18 = smov %s1394_s19 }
 0x2e3   : > { %s1749_s19 = smov %s1398_s20  ;;  %s1750_s20 = smov %s1556_s9 }
 0x2e4   : > { %s1751_s21 = smov %s1545_s29  ;;  %22 = sbr.rel (!%p20_p9) target bundleno = 7 (0x7), region = 106 }
 0x2e9   :  { %878 = vsyncpa [#allocation3], 1 }
 0x2ea   :  { %880 = vsyncpa [#allocation3 + $0x1], 1 }
 0x2eb   :  { %881 = vsyncpa [#allocation6], 1 }
 0x2ec   :  { %882 = vsyncpa [#allocation9], 1 }
 0x2ed   :  { %883 = vsyncpa [#allocation4], 1 }
 0x2ee   :  { %885 = vsyncpa [#allocation4 + $0x1], 1 }

</bundles_post_ra>
